<compile_context>
chip_gen: v7x
topology: tpu7x:2x2x1
jax: 0.10.0
libtpu: 0.0.40
codegen_flags: <defaults>
</compile_context>

<pallas_src>
import math

import jax
import jax.numpy as jnp
from jax.experimental import pallas as pl
from jax.experimental.pallas import tpu as pltpu


def _comp_flatten_kernel(re_ref, im_ref, out_ref):
    # re_ref, im_ref: (TR, L) lane-dense tiles of the real / imag slabs.
    # out_ref:        (2, TR, L); [0] <- real tile, [1] <- imag tile.
    out_ref[0, :, :] = re_ref[...]
    out_ref[1, :, :] = im_ref[...]


def _divisors(n):
    small, large = [], []
    d = 1
    while d * d <= n:
        if n % d == 0:
            small.append(d)
            if d != n // d:
                large.append(n // d)
        d += 1
    return small + large[::-1]


def _chip_tuning():
    """Per-generation (block-element budget, vmem_limit_bytes)."""
    vmem_cap = 128 << 20
    try:
        info = pltpu.get_tpu_info()
        cap = getattr(info, "vmem_capacity_bytes", None)
        if cap:
            vmem_cap = int(cap)
    except Exception:
        pass
    if vmem_cap <= (80 << 20):
        # v7x-class: only 64 MiB physical VMEM but ~3.2 TB/s HBM -> bigger blocks to
        # amortize the fixed ~0.35 us per-grid-step overhead.  8x footprint = 32 MiB.
        return (4 << 20) // 4, 48 << 20
    # v5e / v6e: 128 MiB physical VMEM; 2 MiB blocks sit at the HBM-roofline knee and
    # the 8x double-buffered footprint (16 MiB) fits even v5e's modest scoped default.
    return (2 << 20) // 4, 32 << 20


def _pick_tiling(N, block_elems_budget):
    """Choose (L, R, TR): slab (R, L) with L % 128 == 0, blocks (TR, L), TR | R.

    Preference order: (a) >= 8 grid steps with blocks >= ~512 KiB, (b) >= 2 grid
    steps, (c) a single block.  Within a tier, prefer the biggest block.
    """
    best = None  # (key, L, R, TR)
    for L in (2048, 1024, 512, 256, 128):
        if N % L:
            continue
        R = N // L
        rows_budget = max(8, (block_elems_budget // L) // 8 * 8)
        divs = [d for d in _divisors(R) if d % 8 == 0 and d <= rows_budget]
        min_rows_big = max(8, ((1 << 17) // L) // 8 * 8)  # ~512 KiB of f32 per block
        tier_a = [d for d in divs if R // d >= 8 and d >= min_rows_big]
        tier_b = [d for d in divs if R // d >= 2]
        if tier_a:
            tier, TR = 2, max(tier_a)
        elif tier_b:
            tier, TR = 1, max(tier_b)
        elif divs:
            tier, TR = 0, max(divs)
        elif R * L <= block_elems_budget:
            tier, TR = 0, R  # single full-extent block (allowed by the (8,128) rule)
        else:
            continue
        key = (tier, TR * L, L)
        if best is None or key > best[0]:
            best = (key, L, R, TR)
    if best is None:
        return None
    return best[1], best[2], best[3]


def comp_flatten(z, *, force_pallas=False):
    """complex (B, ...) -> float32 (2B, prod(...)); real rows first, imag rows second."""
    B = z.shape[0]
    F = math.prod(z.shape[1:])
    N = B * F

    # Real / imag extraction.  complex128 would be downcast to float32 (matching the
    # previous revision); real-valued inputs get an all-zero imag half.
    re = jnp.real(z).astype(jnp.float32).reshape(B, F)
    im = jnp.imag(z).astype(jnp.float32).reshape(B, F)

    def xla_fallback():
        return jnp.concatenate([re, im], axis=0)

    if N % 128 != 0:
        return xla_fallback()
    # < 512K elements: overhead-dominated; fused XLA concat is equal or better.
    if N < (1 << 19) and not force_pallas:
        return xla_fallback()

    block_elems_budget, vmem_limit = _chip_tuning()
    tiling = _pick_tiling(N, block_elems_budget)
    if tiling is None:
        return xla_fallback()
    L, R, TR = tiling
    grid_steps = R // TR

    # Overhead guard: if the only legal tiling is tiny blocks over a long grid, the
    # fixed per-step cost dominates and fused XLA is at least as good.
    if not force_pallas and TR * L * 4 < (1 << 17) and grid_steps > 64:
        return xla_fallback()

    out = pl.pallas_call(
        _comp_flatten_kernel,
        out_shape=jax.ShapeDtypeStruct((2, R, L), jnp.float32),
        grid=(grid_steps,),
        in_specs=[
            pl.BlockSpec((TR, L), lambda i: (i, 0)),
            pl.BlockSpec((TR, L), lambda i: (i, 0)),
        ],
        out_specs=pl.BlockSpec((2, TR, L), lambda i: (0, i, 0)),
        compiler_params=pltpu.CompilerParams(
            dimension_semantics=("parallel",),
            allow_input_fusion=[True, True],
            vmem_limit_bytes=vmem_limit,
        ),
        cost_estimate=pl.CostEstimate(
            flops=0, transcendentals=0, bytes_accessed=16 * N),
    )(re.reshape(R, L), im.reshape(R, L))

    # (2, R, L) and (2B, F) share the same row-major element order.
    return out.reshape(2 * B, F)


if __name__ == "__main__":
    key = jax.random.PRNGKey(0)
    k1, k2, k3, k4 = jax.random.split(key, 4)

    # Shape implied by the module: complex (B, C, H, W) = (2, 4, 16, 16).
    B, C, H, W = 2, 4, 16, 16
    re = jax.random.normal(k1, (B, C, H, W), dtype=jnp.float32)
    im = jax.random.normal(k2, (B, C, H, W), dtype=jnp.float32)
    z = jax.lax.complex(re, im)  # complex64

    ref = jnp.concatenate([re.reshape(B, -1), im.reshape(B, -1)], axis=0)

    # Exercise the Pallas kernel path at the example shape (2-step grid here).
    out_pallas = comp_flatten(z, force_pallas=True)
    jax.block_until_ready(out_pallas)
    assert out_pallas.shape == (2 * B, C * H * W)
    assert jnp.allclose(out_pallas, ref), "pallas kernel mismatch vs reference"

    # A second, slightly larger shape exercises a different tiling choice.
    B2, C2, H2, W2 = 2, 8, 32, 32
    re2 = jax.random.normal(k3, (B2, C2, H2, W2), dtype=jnp.float32)
    im2 = jax.random.normal(k4, (B2, C2, H2, W2), dtype=jnp.float32)
    z2 = jax.lax.complex(re2, im2)
    ref2 = jnp.concatenate([re2.reshape(B2, -1), im2.reshape(B2, -1)], axis=0)
    out2 = comp_flatten(z2, force_pallas=True)
    jax.block_until_ready(out2)
    assert out2.shape == (2 * B2, C2 * H2 * W2)
    assert jnp.allclose(out2, ref2), "pallas kernel mismatch vs reference (shape 2)"

    # Public entry point (tiny inputs dispatch to fused XLA by design).
    out = comp_flatten(z)
    jax.block_until_ready(out)
    assert out.shape == (2 * B, C * H * W)
    assert jnp.allclose(out, ref), "dispatcher mismatch vs reference"

    print("KERNEL_OK")
</pallas_src>

<mosaic_0001>
module attributes {stable_mosaic.version = 11 : i64} {
  func.func @_comp_flatten_kernel(%arg0: i32, %arg1: memref<8x128xf32, #tpu.memory_space<vmem>>, %arg2: memref<8x128xf32, #tpu.memory_space<vmem>>, %arg3: memref<2x8x128xf32, #tpu.memory_space<vmem>>) attributes {dimension_semantics = [#tpu.dimension_semantics<parallel>], iteration_bounds = array<i64: 2>, scalar_prefetch = 0 : i64, scratch_operands = 0 : i64, tpu.core_type = #tpu.core_type<tc>, window_params = [{transform_indices = @transform_0, window_bounds = array<i64: 8, 128>}, {transform_indices = @transform_1, window_bounds = array<i64: 8, 128>}, {transform_indices = @transform_2, window_bounds = array<i64: 2, 8, 128>}]} {
    %c0 = arith.constant 0 : index
    %c0_0 = arith.constant 0 : index
    %0 = vector.load %arg1[%c0, %c0_0] : memref<8x128xf32, #tpu.memory_space<vmem>>, vector<8x128xf32>
    %c0_1 = arith.constant 0 : index
    %c0_2 = arith.constant 0 : index
    %c0_3 = arith.constant 0 : index
    %1 = vector.load %arg3[%c0_1, %c0_2, %c0_3] : memref<2x8x128xf32, #tpu.memory_space<vmem>>, vector<1x8x128xf32>
    %2 = vector.shape_cast %1 : vector<1x8x128xf32> to vector<8x128xf32>
    %3 = vector.shape_cast %0 : vector<8x128xf32> to vector<1x8x128xf32>
    tpu.vector_store %arg3[%c0_1, %c0_2, %c0_3], %3 {strides = array<i32>} : memref<2x8x128xf32, #tpu.memory_space<vmem>>, vector<1x8x128xf32>,
    %c0_4 = arith.constant 0 : index
    %c0_5 = arith.constant 0 : index
    %4 = vector.load %arg2[%c0_4, %c0_5] : memref<8x128xf32, #tpu.memory_space<vmem>>, vector<8x128xf32>
    %c1 = arith.constant 1 : index
    %c0_6 = arith.constant 0 : index
    %c0_7 = arith.constant 0 : index
    %5 = vector.load %arg3[%c1, %c0_6, %c0_7] : memref<2x8x128xf32, #tpu.memory_space<vmem>>, vector<1x8x128xf32>
    %6 = vector.shape_cast %5 : vector<1x8x128xf32> to vector<8x128xf32>
    %7 = vector.shape_cast %4 : vector<8x128xf32> to vector<1x8x128xf32>
    tpu.vector_store %arg3[%c1, %c0_6, %c0_7], %7 {strides = array<i32>} : memref<2x8x128xf32, #tpu.memory_space<vmem>>, vector<1x8x128xf32>,
    return
  }
  func.func @transform_0(%arg0: i32) -> (i32, i32) {
    %c0_i32 = arith.constant 0 : i32
    %c0_i32_0 = arith.constant 0 : i32
    return %arg0, %c0_i32 : i32, i32
  }
  func.func @transform_1(%arg0: i32) -> (i32, i32) {
    %c0_i32 = arith.constant 0 : i32
    %c0_i32_0 = arith.constant 0 : i32
    return %arg0, %c0_i32 : i32, i32
  }
  func.func @transform_2(%arg0: i32) -> (i32, i32, i32) {
    %c0_i32 = arith.constant 0 : i32
    %c0_i32_0 = arith.constant 0 : i32
    %c0_i32_1 = arith.constant 0 : i32
    return %c0_i32, %arg0, %c0_i32_0 : i32, i32, i32
  }
}

</mosaic_0001>

<bundles_post_ra>
// kernel: tpu_custom_call.1
= control target key start
LH: loop header
LB: loop body
LE: loop exit
PB: predicated region body
PF: predicated region fallthrough
CT: control target
= control target key end

     0   :  { %7 = vsyncpa [#allocation3], 0  ;;  %s745_s0 = inlined_call_operand.hbm [shape: f32[16,128], index: 0, kind: input, shape index: {}]   ;;  %s746_s1 = inlined_call_operand.hbm [shape: f32[16,128], index: 1, kind: input, shape index: {}]   ;;  %s747_s2 = inlined_call_operand.hbm [shape: f32[2,16,128], index: 2, kind: output, shape index: {}]  }
   0x1   :  { %9 = vsyncpa [#allocation3 + $0x1], 0 }
   0x2   :  { %10 = vsyncpa [#allocation6], 0 }
   0x3   :  { %12 = vsyncpa [#allocation6 + $0x1], 0 }
   0x4   :  { %13 = vsyncpa [#allocation4], 0 }
   0x5   :  { %15 = vsyncpa [#allocation4 + $0x1], 0  ;;  %s533_s9 = smov 0   ;;  %s535_s10 = smov 0  }
   0x6   :  { %s537_s11 = smov 0   ;;  %s539_s12 = smov 0  }
   0x7 LB: > { %s554_s13 = sadd.s32 4294967295, %s510_s12   ;;  %s310_s14 = sadd.s32 4294967294, %s510_s12   ;;  %s510_s12 = sphi %s539_s12, %s766_s12   ;;  %s506_s11 = sphi %s537_s11, %s765_s11   ;;  %s502_s10 = sphi %s535_s10, %s764_s10   ;;  %s498_s9 = sphi %s533_s9, %s763_s9  }
   0x8   : > { %s558_s15 = sadd.s32 1, %s510_s12   ;;  %s28_s16 = sadd.s32 1, %s506_s11 }
   0x9   : > { %s25_s17 = ssub.s32 %s510_s12, %s558_s15  ;;  %p35_p0 = scmp.ne.s32.totalorder %s506_s11, %s502_s10 }
   0xa   : > { %p26_p1 = scmp.eq.s32.totalorder %s25_s17, 0  ;;  %p36_p2 = scmp.eq.s32.totalorder %s510_s12, 0 }
   0xb   : > { %p41_p3 = scmp.ne.s32.totalorder %s502_s10, %s498_s9  ;;  %p42_p4 = scmp.eq.s32.totalorder %s554_s13, 0 }
   0xc   : > { %s570_s18 = scalar_select %p26_p1, %s506_s11, %s28_s16  }
   0xd   : > { %p572_p5 = por %p36_p2, %p35_p0  ;;  %p576_p6 = por %p42_p4, %p41_p3 }
   0xe   : > { %p91_p7 = scmp.eq.s32.totalorder %s554_s13, 1  ;;  %p97_p8 = scmp.eq.s32.totalorder %s310_s14, 1 }
   0xf   : > { %s751_s20 = scalar_select %p576_p6, 1, 0 }
  0x10   : > { %p343_p10 = scmp.lt.s32.totalorder %s510_s12, 2  ;;  %p583_p11 = por %p91_p7, %p35_p0 }
  0x11   : > { %p587_p12 = por %p97_p8, %p41_p3  ;;  %s592_s23 = sand.u32 1, %s506_s11  }
  0x12   : > { %s752_s21 = scalar_select %p583_p11, 1, 0 }
  0x13   : > { %s753_s22 = scalar_select %p587_p12, 1, 0 }
  0x14   : > { %s314_s24 = sshll.u32 %s510_s12, 7  ;;  %s313_s25 = sshll.u32 %s592_s23, 3 }
  0x15   : > { %s601_s28 = scalar_lea.hbm %s745_s0, %s314_s24  ;;  %s121_s29 = scalar_lea.vmem [#allocation2], %s313_s25 }
  0x16   : > { %s128_s30 = sshll.u32 %s121_s29, 4  ;;  %p607_p13 = pnand %p343_p10, %p572_p5  ;;  %s611_s30 = int_to_ptr.vmem [resolvable:$true] %s128_s30 }
  0x17   : > { %s118_s4 = scalar_lea.sflag [#allocation3], %s592_s23  ;;  %s380_s5 = scalar_lea.hbm %s601_s28, 128 }
  0x18   : > { %p381_p2 = scmp.ne.s32.totalorder %s601_s28, %s380_s5  ;;  %p382_p3 = pneg %p607_p13 }
  0x19   : > { %s385_s8 = scalar_lea.hbm %s745_s0, 256  ;;  %p386_p5 = scmp.lt.u32.totalorder %s601_s28, %s745_s0 }
  0x1a   : > { %p383_p4 = pnand %p382_p3, %p381_p2  ;;  %p387_p8 = scmp.lt.u32.totalorder %s385_s8, %s380_s5 }
  0x1b   : > { %p389_p9 = scmp.lt.u32.totalorder %s380_s5, %s601_s28 }
  0x1c   : > { %p384_p7 = pneg %p383_p4  ;;  %p388_p10 = por %p387_p8, %p386_p5 }
  0x1e   : > { %p390_p0 = por %p389_p9, %p388_p10 }
  0x20   : > { %p391_p1 = pnand %p390_p0, %p384_p7 }
  0x22   : > { %394 = shalt.err (!%p391_p1)
}
  0x23   : > { %s395_s17 = scalar_lea.vmem %s611_s30, 128  ;;  %s512_s19 = smov [#allocation2]  }
  0x24   : > { %p396_p2 = scmp.ne.s32.totalorder %s611_s30, %s395_s17  ;;  %s400_s26 = sshll.u32 %s512_s19, 4  ;;  %s401_s26 = int_to_ptr.vmem [resolvable:$false] %s400_s26 }
  0x25   : > { %s402_s27 = scalar_lea.vmem %s401_s26, 256  ;;  %p403_p11 = scmp.lt.s32.totalorder %s611_s30, %s401_s26 }
  0x26   : > { %p398_p4 = pnand %p396_p2, %p382_p3  ;;  %p404_p5 = scmp.lt.s32.totalorder %s402_s27, %s395_s17 }
  0x28   : > { %p399_p12 = pneg %p398_p4  ;;  %p405_p8 = por %p404_p5, %p403_p11 }
  0x2a   : > { %p406_p9 = pnand %p405_p8, %p399_p12 }
  0x2c   : > { %409 = shalt.err (!%p406_p9)
}
  0x2d   : > { %335 = dma.hbm_to_vmem [thread:$0]  (!%p607_p13), %s601_s28, 128, %s611_s30, %s118_s4  }
  0x2e   : > { %p755_p0 = scmp.lt.s32.totalorder %s510_s12, 3  ;;  %p756_p1 = scmp.ge.s32.totalorder %s510_s12, 1 }
  0x2f   : > { %s654_s7 = scalar_lea.hbm %s746_s1, %s314_s24  ;;  %s139_s8 = scalar_lea.vmem [#allocation5], %s313_s25 }
  0x30   : > { %p645_p7 = pnand %p756_p1, %p755_p0  ;;  %s146_s14 = sshll.u32 %s139_s8, 4  ;;  %s147_s14 = int_to_ptr.vmem [resolvable:$true] %s146_s14 }
  0x31   : > { %s136_s28 = scalar_lea.sflag [#allocation6], %s592_s23  ;;  %s410_s30 = scalar_lea.hbm %s654_s7, 128 }
  0x32   : > { %s757_s29 = scalar_select %p645_p7, 1, 0 }
  0x33   : > { %p411_p11 = scmp.ne.s32.totalorder %s654_s7, %s410_s30  ;;  %s415_s24 = scalar_lea.hbm %s746_s1, 256 }
  0x34   : > { %p416_p2 = scmp.lt.u32.totalorder %s654_s7, %s746_s1  ;;  %p417_p4 = scmp.lt.u32.totalorder %s415_s24, %s410_s30 }
  0x35   : > { %p413_p12 = pnand %p411_p11, %p382_p3  ;;  %p419_p8 = scmp.lt.u32.totalorder %s410_s30, %s654_s7 }
  0x36   : > { %p418_p5 = por %p417_p4, %p416_p2 }
  0x37   : > { %p414_p10 = pneg %p413_p12 }
  0x38   : > { %p420_p9 = por %p419_p8, %p418_p5 }
  0x3a   : > { %p421_p0 = pnand %p420_p9, %p414_p10 }
  0x3c   : > { %424 = shalt.err (!%p421_p0)
}
  0x3d   : > { %s425_s23 = scalar_lea.vmem %s147_s14, 128  ;;  %s513_s25 = smov [#allocation5]  }
  0x3e   : > { %p426_p1 = scmp.ne.s32.totalorder %s147_s14, %s425_s23  ;;  %s430_s26 = sshll.u32 %s513_s25, 4  ;;  %s431_s26 = int_to_ptr.vmem [resolvable:$false] %s430_s26 }
  0x3f   : > { %s432_s27 = scalar_lea.vmem %s431_s26, 256  ;;  %p433_p6 = scmp.lt.s32.totalorder %s147_s14, %s431_s26 }
  0x40   : > { %p428_p11 = pnand %p426_p1, %p382_p3  ;;  %p434_p7 = scmp.lt.s32.totalorder %s432_s27, %s425_s23 }
  0x42   : > { %p429_p12 = pneg %p428_p11  ;;  %p435_p2 = por %p434_p7, %p433_p6 }
  0x44   : > { %p436_p4 = pnand %p435_p2, %p429_p12 }
  0x46   : > { %439 = shalt.err (!%p436_p4)
}
  0x47   : > { %338 = dma.hbm_to_vmem [thread:$0]  (!%p607_p13), %s654_s7, 128, %s147_s14, %s136_s28  }
  0x48   : > { %p758_p10 = scmp.ne.s32.totalorder %s757_s29, 0 }
  0x49   : > { %s681_s5 = sand.u32 (!%p758_p10), 1, %s502_s10   ;;  %p759_p3 = scmp.ne.s32.totalorder (!%p758_p10), %s751_s20, 0 }
  0x4a   : > { %155 = sbr.rel (%p758_p10) target bundleno = 112 (0x70), region = 28  ;;  %s318_s6 = sshll.u32 (!%p758_p10), %s681_s5, 3 }
  0x4b   : > { %s158_s8 = scalar_lea.sflag (!%p758_p10), [#allocation3], %s681_s5  ;;  %s161_s30 = scalar_lea.vmem (!%p758_p10), [#allocation2], %s318_s6 }
  0x51   : > { %485 = dma.done.wait (%p759_p3), %s158_s8, 128  }
  0x52   : > { %487 = vsyncadd (%p759_p3), %s158_s8, 4294967168  ;;  %s167_s3 = scalar_lea.sflag [#allocation6], %s681_s5  ;;  %s170_s7 = scalar_lea.vmem [#allocation5], %s318_s6 }
  0x53   : > { %489 = dma.done.wait (%p759_p3), %s167_s3, 128  }
  0x54   : > { %491 = vsyncadd (%p759_p3), %s167_s3, 4294967168  ;;  %s320_s29 = sshll.u32 %s681_s5, 4  ;;  %s323_s14 = sshll.u32 %s554_s13, 7  ;;  %v196_v0 = vld [vmem:[%s161_s30] sm:$0xff]  ;;  %v198_v1 = vld [vmem:[%s170_s7] sm:$0xff] }
  0x55   : > { %s195_s28 = scalar_lea.vmem [#allocation7], %s320_s29  ;;  %s699_s17 = scalar_lea.hbm %s747_s2, %s323_s14 }
  0x56   : > { %s214_s4 = sshll.u32 %s195_s28, 4  ;;  %197 = vst [vmem:[%s195_s28] sm:$0xff] %v196_v0  ;;  %321 = vst [vmem:[%s195_s28 + $0x8] sm:$0xff] %v198_v1  ;;  %s202_s20 = scalar_lea.sflag [#allocation4], %s681_s5  ;;  %s701_s4 = int_to_ptr.vmem [resolvable:$true] %s214_s4 }
  0x57   : > { %s440_s19 = scalar_lea.vmem %s701_s4, 256  ;;  %p760_p13 = scmp.ne.s32.totalorder %s752_s21, 0 }
  0x58   : > { %p441_p6 = scmp.ne.s32.totalorder %s701_s4, %s440_s19  ;;  %s514_s13 = smov [#allocation7]  }
  0x59   : > { %s444_s23 = sshll.u32 %s514_s13, 4  ;;  %s445_s23 = int_to_ptr.vmem [resolvable:$false] %s444_s23 }
  0x5a   : > { %p442_p7 = pnand %p441_p6, %p760_p13  ;;  %s446_s25 = scalar_lea.vmem %s445_s23, 512 }
  0x5b   : > { %p447_p8 = scmp.lt.s32.totalorder %s701_s4, %s445_s23  ;;  %p448_p9 = scmp.lt.s32.totalorder %s446_s25, %s440_s19 }
  0x5c   : > { %p443_p5 = pneg %p442_p7 }
  0x5d   : > { %p449_p0 = por %p448_p9, %p447_p8 }
  0x5f   : > { %p450_p1 = pnand %p449_p0, %p443_p5 }
  0x61   : > { %453 = shalt.err (!%p450_p1)
}
  0x62   : > { %s454_s26 = scalar_lea.hbm %s699_s17, 256  ;;  %s458_s8 = scalar_lea.hbm %s747_s2, 512 }
  0x63   : > { %p455_p11 = scmp.ne.s32.totalorder %s699_s17, %s454_s26  ;;  %p459_p4 = scmp.lt.u32.totalorder %s699_s17, %s747_s2 }
  0x64   : > { %p460_p10 = scmp.lt.u32.totalorder %s458_s8, %s454_s26  ;;  %p462_p6 = scmp.lt.u32.totalorder %s454_s26, %s699_s17 }
  0x65   : > { %p456_p12 = pnand %p455_p11, %p760_p13 }
  0x66   : > { %p461_p3 = por %p460_p10, %p459_p4 }
  0x67   : > { %p457_p2 = pneg %p456_p12 }
  0x68   : > { %p463_p7 = por %p462_p6, %p461_p3 }
  0x6a   : > { %p464_p5 = pnand %p463_p7, %p457_p2 }
  0x6c   : > { %467 = shalt.err (!%p464_p5)
}
  0x6d   : > { %s515_s7 = smov 128   ;;  %s516_s29 = smov 256  }
  0x6e   : > { %s517_s14 = smov 8  }
  0x6f   : > { %330 = dma.vmem_to_hbm [thread:$0]  (%p760_p13), %s701_s4, 256, %s699_s17, %s202_s20, %s515_s7, %s516_s29, %s517_s14  }
  0x70 PF: > { %s229_s28 = sand.u32 1, %s498_s9   ;;  %p761_p8 = scmp.ne.s32.totalorder %s753_s22, 0 }
  0x71   : > { %p762_p9 = scmp.ge.s32.totalorder %s510_s12, 2  ;;  %s230_s16 = scalar_lea.sflag [#allocation4], %s229_s28 }
  0x73   : > { %p340_p0 = pnand %p762_p9, %p761_p8 }
  0x75   : > { %493 = dma.done.wait (!%p340_p0), %s230_s16, 256  }
  0x76   : > { %495 = vsyncadd (!%p340_p0), %s230_s16, 4294967040  ;;  %p18_p1 = scmp.ge.s32.totalorder %s558_s15, 4   ;;  %s763_s9 = smov %s502_s10 }
  0x77   : > { %s764_s10 = smov %s506_s11  ;;  %s765_s11 = smov %s570_s18 }
  0x78   : > { %s766_s12 = smov %s558_s15  ;;  %20 = sbr.rel (!%p18_p1) target bundleno = 7 (0x7), region = 87 }
  0x7f   :  { %235 = vsyncpa [#allocation3], 1 }
  0x80   :  { %237 = vsyncpa [#allocation3 + $0x1], 1 }
  0x81   :  { %238 = vsyncpa [#allocation6], 1 }
  0x82   :  { %240 = vsyncpa [#allocation6 + $0x1], 1 }
  0x83   :  { %241 = vsyncpa [#allocation4], 1 }
  0x84   :  { %243 = vsyncpa [#allocation4 + $0x1], 1 }

</bundles_post_ra>
